<compile_context>
chip_gen: v6e
topology: v6e:2x2x1
jax: 0.10.0
libtpu: 0.0.40
codegen_flags: <defaults>
</compile_context>

<pallas_src>
from functools import partial

import jax
import jax.numpy as jnp
from jax.experimental import pallas as pl
from jax.experimental.pallas import tpu as pltpu


MAX_TB = 2048  # batch-tile cap: ~1 MiB lane-padded per input buffer, VMEM-safe on v7x


def fused_linear_kernel(x_ref, w_ref, b_ref, o_ref):
    # x block: (tb, 10), W: (10, 2), b: (1, 2) -> y block: (tb, 2)
    y = jnp.dot(x_ref[...], w_ref[...], preferred_element_type=jnp.float32)
    o_ref[...] = (y + b_ref[...]).astype(o_ref.dtype)


def _round_up(n, m):
    return ((n + m - 1) // m) * m


def _pick_tile(B):
    # Single full block for tiny batches (block_shape == full dim is always legal).
    if B < 2 * 128:
        return B
    # Otherwise 128-aligned tiles, capped at MAX_TB, with >= 2 tiles so the
    # "parallel" batch axis can use both TensorCores on v7x.
    return min(MAX_TB, _round_up(pl.cdiv(B, 2), 128))


@jax.jit
def simplenet_forward(x, w_fused, b_fused):
    """y = fc2(fc1(x)), with the two linears pre-fused into one affine map."""
    B, in_features = x.shape
    out_features = w_fused.shape[1]

    tb = _pick_tile(B)                 # static: derived from shapes only
    n_tiles = pl.cdiv(B, tb)

    return pl.pallas_call(
        fused_linear_kernel,
        out_shape=jax.ShapeDtypeStruct((B, out_features), x.dtype),
        grid=(n_tiles,),
        in_specs=[
            pl.BlockSpec((tb, in_features), lambda i: (i, 0)),            # x tile
            pl.BlockSpec((in_features, out_features), lambda i: (0, 0)),  # W_fused
            pl.BlockSpec((1, out_features), lambda i: (0, 0)),            # b_fused
        ],
        out_specs=pl.BlockSpec((tb, out_features), lambda i: (i, 0)),      # y tile
        compiler_params=pltpu.CompilerParams(
            dimension_semantics=("parallel",),  # batch tiles are independent
        ),
    )(x, w_fused, b_fused)


def fuse_params(w1, b1, w2, b2):
    """SimpleNet has no nonlinearity: fold fc1 and fc2 into one affine map.

    Done ONCE at parameter setup (not per forward call)."""
    w_fused = w1 @ w2            # (10, 2)
    b_fused = b1 @ w2 + b2       # (1, 2)
    return w_fused, b_fused


def init_params(key):
    # Deterministic init mimicking nn.Linear's uniform(-1/sqrt(fan_in), +1/sqrt(fan_in)).
    k1, k2, k3, k4 = jax.random.split(key, 4)
    in1, out1 = 10, 5
    in2, out2 = 5, 2
    bound1 = 1.0 / jnp.sqrt(in1)
    bound2 = 1.0 / jnp.sqrt(in2)
    # stored as (in, out) == W.T relative to PyTorch's (out, in)
    w1 = jax.random.uniform(k1, (in1, out1), jnp.float32, -bound1, bound1)
    b1 = jax.random.uniform(k2, (1, out1), jnp.float32, -bound1, bound1)
    w2 = jax.random.uniform(k3, (in2, out2), jnp.float32, -bound2, bound2)
    b2 = jax.random.uniform(k4, (1, out2), jnp.float32, -bound2, bound2)
    return w1, b1, w2, b2


if __name__ == "__main__":
    key = jax.random.PRNGKey(0)
    kx, kp = jax.random.split(key)

    B = 256  # exercises a 2-tile pipelined grid (tb = 128)
    x = jax.random.normal(kx, (B, 10), jnp.float32)
    w1, b1, w2, b2 = init_params(kp)

    # One-time parameter fusion (outside the per-call path).
    w_fused, b_fused = fuse_params(w1, b1, w2, b2)

    out = simplenet_forward(x, w_fused, b_fused)
    out = jax.block_until_ready(out)

    # Reference check in plain JAX (same math as PyTorch fc2(fc1(x))).
    ref = (x @ w1 + b1) @ w2 + b2
    assert out.shape == (B, 2)
    assert jnp.allclose(out, ref, atol=1e-4, rtol=1e-5)

    print("KERNEL_OK")
</pallas_src>

<mosaic_0001>
module attributes {stable_mosaic.version = 11 : i64} {
  func.func @fused_linear_kernel(%arg0: i32, %arg1: memref<128x10xf32, #tpu.memory_space<vmem>>, %arg2: memref<10x2xf32, #tpu.memory_space<vmem>>, %arg3: memref<1x2xf32, #tpu.memory_space<vmem>>, %arg4: memref<128x2xf32, #tpu.memory_space<vmem>>) attributes {dimension_semantics = [#tpu.dimension_semantics<parallel>], iteration_bounds = array<i64: 2>, scalar_prefetch = 0 : i64, scratch_operands = 0 : i64, tpu.core_type = #tpu.core_type<tc>, window_params = [{transform_indices = @transform_0, window_bounds = array<i64: 128, 10>}, {pipeline_mode = #tpu.pipeline_mode<synchronous>, transform_indices = @transform_1, window_bounds = array<i64: 10, 2>}, {pipeline_mode = #tpu.pipeline_mode<synchronous>, transform_indices = @transform_2, window_bounds = array<i64: 1, 2>}, {transform_indices = @transform_3, window_bounds = array<i64: 128, 2>}]} {
    %c0 = arith.constant 0 : index
    %c0_0 = arith.constant 0 : index
    %0 = vector.load %arg1[%c0, %c0_0] : memref<128x10xf32, #tpu.memory_space<vmem>>, vector<128x10xf32>
    %c0_1 = arith.constant 0 : index
    %c0_2 = arith.constant 0 : index
    %1 = vector.load %arg2[%c0_1, %c0_2] : memref<10x2xf32, #tpu.memory_space<vmem>>, vector<10x2xf32>
    %cst = arith.constant dense<0.000000e+00> : vector<128x2xf32>
    %2 = tpu.matmul %0, %1, %cst {dimension_numbers = #tpu.dot_dimension_numbers<[1], [0], [0], [1], [0, 0, 1, 1], [], []>} : vector<128x10xf32>, vector<10x2xf32>, vector<128x2xf32> -> vector<128x2xf32>
    %c0_3 = arith.constant 0 : index
    %c0_4 = arith.constant 0 : index
    %3 = vector.load %arg3[%c0_3, %c0_4] : memref<1x2xf32, #tpu.memory_space<vmem>>, vector<1x2xf32>
    %4 = vector.broadcast %3 : vector<1x2xf32> to vector<128x2xf32>
    %5 = arith.addf %2, %4 : vector<128x2xf32>
    %c0_5 = arith.constant 0 : index
    %c0_6 = arith.constant 0 : index
    %6 = vector.load %arg4[%c0_5, %c0_6] : memref<128x2xf32, #tpu.memory_space<vmem>>, vector<128x2xf32>
    tpu.vector_store %arg4[%c0_5, %c0_6], %5 {strides = array<i32>} : memref<128x2xf32, #tpu.memory_space<vmem>>, vector<128x2xf32>,
    return
  }
  func.func @transform_0(%arg0: i32) -> (i32, i32) {
    %c0_i32 = arith.constant 0 : i32
    %c0_i32_0 = arith.constant 0 : i32
    return %arg0, %c0_i32 : i32, i32
  }
  func.func @transform_1(%arg0: i32) -> (i32, i32) {
    %c0_i32 = arith.constant 0 : i32
    %c0_i32_0 = arith.constant 0 : i32
    %c0_i32_1 = arith.constant 0 : i32
    return %c0_i32, %c0_i32_0 : i32, i32
  }
  func.func @transform_2(%arg0: i32) -> (i32, i32) {
    %c0_i32 = arith.constant 0 : i32
    %c0_i32_0 = arith.constant 0 : i32
    %c0_i32_1 = arith.constant 0 : i32
    return %c0_i32, %c0_i32_0 : i32, i32
  }
  func.func @transform_3(%arg0: i32) -> (i32, i32) {
    %c0_i32 = arith.constant 0 : i32
    %c0_i32_0 = arith.constant 0 : i32
    return %arg0, %c0_i32 : i32, i32
  }
}

</mosaic_0001>

<bundles_post_ra>
// kernel: simplenet_forward.1
= control target key start
LH: loop header
LB: loop body
LE: loop exit
PB: predicated region body
PF: predicated region fallthrough
CT: control target
= control target key end

     0   :  { %s585_s12 = smov 0   ;;  %s668_s0 = inlined_call_operand.vmem [shape: f32[256,10], index: 0, kind: input, shape index: {}]   ;;  %s669_s1 = inlined_call_operand.vmem [shape: f32[10,2], index: 1, kind: input, shape index: {}]   ;;  %s670_s2 = inlined_call_operand.vmem [shape: f32[1,2], index: 2, kind: input, shape index: {}]   ;;  %s671_s3 = inlined_call_operand.vmem [shape: f32[256,2], index: 3, kind: output, shape index: {}]  }
   0x1 LB: > { %s470_s13 = sadd.s32 4294967295, %s563_s12   ;;  %p474_p0 = scmp.ge.s32.totalorder %s563_s12, 1  ;;  %s563_s12 = sphi %s585_s12, %s13_s12  }
   0x2   : > { %p138_p1 = scmp.lt.s32.totalorder %s563_s12, 3 }
   0x4   : > { %p139_p2 = pnand %p474_p0, %p138_p1 }
   0x5   : > { %s475_s18 = sshll.u32 (!%p139_p2), %s470_s13, 4 }
   0x6   : > { %142 = sbr.rel (%p139_p2) target bundleno = 227 (0xe3), region = 32  ;;  %p163_p3 = scmp.lt.s32.totalorder (!%p139_p2), %s475_s18, 31 }
   0xb   : > { %v191_v0 = vld [vmem:[%s669_s1 + $0x8] sm:$0x3]  ;;  %vm248_vm0 = vcmask 1041408   ;;  %v190_v1 = vld [vmem:[%s669_s1] sm:$0xff]  ;;  %s673_s18 = smov (!%p163_p3, %s475_s18), 31  ;;  %vm199_vm1 = vcmask 80896  }
   0xc   : > { %517 = vmatprep.subr.msk.mxu0 %vm248_vm0, %v191_v0  ;;  %545 = vmatprep.subr.msk.mxu1 %vm248_vm0, %v191_v0  ;;  %s476_s19 = sshll.u32 %s673_s18, 3  ;;  %v479_v18 = vld [vmem:[%s670_s2] ss:$0 sm:$0xff]  ;;  %vm397_vm2 = vcmask 15360  }
   0xd   : > { %518 = vmatpush3.msk.msra.mxu0 %vm248_vm0, %v191_v0  ;;  %547 = vmatpush3.msk.msra.mxu1 %vm248_vm0, %v191_v0  ;;  %s166_s22 = scalar_lea.vmem %s668_s0, %s476_s19  ;;  %s631_s27 = scalar_lea.vmem %s671_s3, %s476_s19 }
   0xe   : > { %519 = vmatprep.subr.mxu0 %v190_v1  ;;  %546 = vmatprep.subr.mxu1 %v190_v1  ;;  %v174_v2 = vld [vmem:[%s166_s22] sm:$0xff]  ;;  %v175_v4 = vld [vmem:[%s166_s22 + $0x8] sm:$0xff]  ;;  %v176_v6 = vld [vmem:[%s166_s22 + $0x10] sm:$0xff] }
   0xf   : > { %520 = vmatpush3.msra.mxu0 %v190_v1  ;;  %548 = vmatpush3.msra.mxu1 %v190_v1  ;;  %v182_v3 = vld [vmem:[%s166_s22 + $0x40] sm:$0xff]  ;;  %v183_v5 = vld [vmem:[%s166_s22 + $0x48] sm:$0xff]  ;;  %v184_v7 = vld [vmem:[%s166_s22 + $0x50] sm:$0xff] }
  0x10   : > { %521 = vmatprep.mubr.msk.f32.mxu0 %vm199_vm1, %v174_v2  ;;  %533 = vmatprep.mubr.msk.f32.mxu1 %vm199_vm1, %v182_v3  ;;  %v177_v8 = vld [vmem:[%s166_s22 + $0x18] sm:$0xff]  ;;  %v178_v10 = vld [vmem:[%s166_s22 + $0x20] sm:$0xff]  ;;  %v179_v12 = vld [vmem:[%s166_s22 + $0x28] sm:$0xff] }
  0x11   : > { %522 = vmatmul.mubr.msk.f32.vlgmr.msra.gmra.mxu0 %vm199_vm1, %v175_v4  ;;  %534 = vmatmul.mubr.msk.f32.vlgmr.msra.gmra.mxu1 %vm199_vm1, %v183_v5  ;;  %v185_v9 = vld [vmem:[%s166_s22 + $0x58] sm:$0xff]  ;;  %v186_v11 = vld [vmem:[%s166_s22 + $0x60] sm:$0xff]  ;;  %v187_v13 = vld [vmem:[%s166_s22 + $0x68] sm:$0xff] }
  0x12   : > { %524 = vmatprep.mubr.msk.f32.mxu0 %vm199_vm1, %v176_v6  ;;  %536 = vmatprep.mubr.msk.f32.mxu1 %vm199_vm1, %v184_v7  ;;  %v180_v14 = vld [vmem:[%s166_s22 + $0x30] sm:$0xff]  ;;  %v181_v16 = vld [vmem:[%s166_s22 + $0x38] sm:$0xff] }
  0x13   : > { %v188_v15 = vld [vmem:[%s166_s22 + $0x70] sm:$0xff]  ;;  %v189_v17 = vld [vmem:[%s166_s22 + $0x78] sm:$0xff] }
  0x15   : > { %525 = vmatmul.mubr.msk.f32.gmra.mxu0 %vm199_vm1, %v177_v8  ;;  %537 = vmatmul.mubr.msk.f32.gmra.mxu1 %vm199_vm1, %v185_v9 }
  0x16   : > { %527 = vmatprep.mubr.msk.f32.mxu0 %vm199_vm1, %v178_v10  ;;  %539 = vmatprep.mubr.msk.f32.mxu1 %vm199_vm1, %v186_v11 }
  0x19   : > { %528 = vmatmul.mubr.msk.f32.gmra.mxu0 %vm199_vm1, %v179_v12  ;;  %540 = vmatmul.mubr.msk.f32.gmra.mxu1 %vm199_vm1, %v187_v13 }
  0x1a   : > { %530 = vmatprep.mubr.msk.f32.mxu0 %vm199_vm1, %v180_v14  ;;  %542 = vmatprep.mubr.msk.f32.mxu1 %vm199_vm1, %v188_v15 }
  0x1d   : > { %531 = vmatmul.mubr.msk.f32.gmra.mxu0 %vm199_vm1, %v181_v16  ;;  %543 = vmatmul.mubr.msk.f32.gmra.mxu1 %vm199_vm1, %v189_v17 }
  0xd1   : > { %v523_v19 = vpop.f32.mrf.mxu0  ;;  %v535_v20 = vpop.f32.mrf.mxu1 }
  0xd2   : > { %v324_v21 = vadd.f32 %v523_v19, %v479_v18  ;;  %v364_v22 = vadd.f32 %v535_v20, %v479_v18 }
  0xd3   : > { %v318_v23 = vpop.f32.mrf.mxu0  ;;  %v358_v24 = vpop.f32.mrf.mxu1 }
  0xd4   : > { %399 = vst.msk [vmem:[%s631_s27 + $0x8] sm:$0xff] %vm397_vm2, %v324_v21  ;;  %407 = vst.msk [vmem:[%s631_s27 + $0x48] sm:$0xff] %vm397_vm2, %v364_v22  ;;  %v319_v25 = vadd.f32 %v479_v18, %v318_v23  ;;  %v359_v26 = vadd.f32 %v479_v18, %v358_v24 }
  0xd5   : > { %v526_v27 = vpop.f32.mrf.mxu0  ;;  %v538_v28 = vpop.f32.mrf.mxu1 }
  0xd6   : > { %398 = vst.msk [vmem:[%s631_s27] sm:$0xff] %vm397_vm2, %v319_v25  ;;  %406 = vst.msk [vmem:[%s631_s27 + $0x40] sm:$0xff] %vm397_vm2, %v359_v26  ;;  %v334_v29 = vadd.f32 %v526_v27, %v479_v18  ;;  %v374_v30 = vadd.f32 %v538_v28, %v479_v18 }
  0xd7   : > { %v328_v31 = vpop.f32.mrf.mxu0  ;;  %v368_v32 = vpop.f32.mrf.mxu1 }
  0xd8   : > { %401 = vst.msk [vmem:[%s631_s27 + $0x18] sm:$0xff] %vm397_vm2, %v334_v29  ;;  %409 = vst.msk [vmem:[%s631_s27 + $0x58] sm:$0xff] %vm397_vm2, %v374_v30  ;;  %v329_v33 = vadd.f32 %v479_v18, %v328_v31  ;;  %v369_v34 = vadd.f32 %v479_v18, %v368_v32 }
  0xd9   : > { %v529_v35 = vpop.f32.mrf.mxu0  ;;  %v541_v36 = vpop.f32.mrf.mxu1 }
  0xda   : > { %400 = vst.msk [vmem:[%s631_s27 + $0x10] sm:$0xff] %vm397_vm2, %v329_v33  ;;  %408 = vst.msk [vmem:[%s631_s27 + $0x50] sm:$0xff] %vm397_vm2, %v369_v34  ;;  %v344_v37 = vadd.f32 %v529_v35, %v479_v18  ;;  %v384_v38 = vadd.f32 %v541_v36, %v479_v18 }
  0xdb   : > { %v338_v39 = vpop.f32.mrf.mxu0  ;;  %v378_v40 = vpop.f32.mrf.mxu1 }
  0xdc   : > { %403 = vst.msk [vmem:[%s631_s27 + $0x28] sm:$0xff] %vm397_vm2, %v344_v37  ;;  %411 = vst.msk [vmem:[%s631_s27 + $0x68] sm:$0xff] %vm397_vm2, %v384_v38  ;;  %v339_v41 = vadd.f32 %v479_v18, %v338_v39  ;;  %v379_v42 = vadd.f32 %v479_v18, %v378_v40 }
  0xdd   : > { %v532_v43 = vpop.f32.mrf.mxu0  ;;  %v544_v44 = vpop.f32.mrf.mxu1 }
  0xde   : > { %402 = vst.msk [vmem:[%s631_s27 + $0x20] sm:$0xff] %vm397_vm2, %v339_v41  ;;  %410 = vst.msk [vmem:[%s631_s27 + $0x60] sm:$0xff] %vm397_vm2, %v379_v42  ;;  %v354_v45 = vadd.f32 %v532_v43, %v479_v18  ;;  %v394_v46 = vadd.f32 %v544_v44, %v479_v18 }
  0xdf   : > { %v348_v47 = vpop.f32.mrf.mxu0  ;;  %v388_v48 = vpop.f32.mrf.mxu1 }
  0xe0   : > { %405 = vst.msk [vmem:[%s631_s27 + $0x38] sm:$0xff] %vm397_vm2, %v354_v45  ;;  %413 = vst.msk [vmem:[%s631_s27 + $0x78] sm:$0xff] %vm397_vm2, %v394_v46  ;;  %v349_v49 = vadd.f32 %v479_v18, %v348_v47  ;;  %v389_v50 = vadd.f32 %v479_v18, %v388_v48 }
  0xe2   : > { %404 = vst.msk [vmem:[%s631_s27 + $0x30] sm:$0xff] %vm397_vm2, %v349_v49  ;;  %412 = vst.msk [vmem:[%s631_s27 + $0x70] sm:$0xff] %vm397_vm2, %v389_v50 }
  0xe3 PF: > { %s13_s12 = sadd.s32 1, %s563_s12  }
  0xe4   : > { %p10_p4 = scmp.ge.s32.totalorder %s13_s12, 4  }
  0xe6   :  { %12 = sbr.rel (!%p10_p4) target bundleno = 1 (0x1), region = 62 }

</bundles_post_ra>
